<compile_context>
chip_gen: v7x
topology: tpu7x:2x2x1
jax: 0.10.0
libtpu: 0.0.40
codegen_flags: <defaults>
</compile_context>

<pallas_src>
import functools

import jax
import jax.numpy as jnp
from jax import lax
from jax.experimental import pallas as pl
from jax.experimental.pallas import tpu as pltpu

TEMP = 0.05          # InstanceMemory(temp=0.05)
EPS_NORM = 1e-12     # F.normalize default eps
EPS_NCE = 1e-8       # compute_nce_loss epsilon
NEG_INF = -1e30      # finite "minus infinity" for masked (padded) columns


def _instance_memory_nce_kernel(n_valid, inv_temp, needs_mask,
                                img_ref, feat_ref, pid_ref, mem_pid_ref,
                                loss_ref,
                                x_vmem, m_acc, pos_acc, all_acc):
    """One grid step processes one [TN, D] tile of the memory bank.

    img_ref     : [B, D]   raw image features (any float dtype)
    feat_ref    : [TN, D]  memory-bank tile (streamed, double-buffered)
    pid_ref     : [B, 1]   batch pids (int32)
    mem_pid_ref : [1, TN]  memory-bank pid tile (int32, -1 padding)
    loss_ref    : [1, 1]   scalar mean InfoNCE loss (written on last step only)
    x_vmem      : [B, D]   normalized image features * (1/temp), MXU dtype
    m_acc/pos_acc/all_acc : [B, 1] running max / positive-exp sum / total-exp sum
    """
    k = pl.program_id(0)
    nk = pl.num_programs(0)
    tn = feat_ref.shape[0]

    @pl.when(k == 0)
    def _init():
        # F.normalize(x, dim=1): x / max(||x||, eps) == x * rsqrt(max(||x||^2, eps^2)).
        # 1/temp is folded in here (one-time) so the per-tile score scaling
        # disappears from the streaming loop.
        x = img_ref[...].astype(jnp.float32)
        sq = jnp.sum(x * x, axis=1, keepdims=True)
        x = x * (lax.rsqrt(jnp.maximum(sq, EPS_NORM * EPS_NORM)) * inv_temp)
        x_vmem[...] = x.astype(x_vmem.dtype)
        m_acc[...] = jnp.full_like(m_acc, NEG_INF)
        pos_acc[...] = jnp.zeros_like(pos_acc)
        all_acc[...] = jnp.zeros_like(all_acc)

    # scores = (x @ feats.T) / temp — contract both operands on their last dim,
    # so no explicit transpose of the [TN, D] tile is ever materialized.
    scores = lax.dot_general(
        x_vmem[...], feat_ref[...],
        dimension_numbers=(((1,), (1,)), ((), ())),
        preferred_element_type=jnp.float32)                       # [B, TN]

    if needs_mask:
        # Only emitted when N is not a multiple of the tile (compile-time).
        col = k * tn + lax.broadcasted_iota(jnp.int32, (1, tn), 1)  # [1, TN]
        scores = jnp.where(col < n_valid, scores, NEG_INF)

    same_pid = pid_ref[...] == mem_pid_ref[...]                   # [B, TN] bool

    # Streaming, max-shifted accumulation (the pos/tot ratio is shift invariant,
    # so the loss is identical to the unshifted PyTorch reference but exp can
    # no longer overflow).
    m_old = m_acc[...]
    m_new = jnp.maximum(m_old, jnp.max(scores, axis=1, keepdims=True))
    rescale = jnp.exp(m_old - m_new)
    p = jnp.exp(scores - m_new)                                   # [B, TN]
    pos_acc[...] = rescale * pos_acc[...] + jnp.sum(
        jnp.where(same_pid, p, 0.0), axis=1, keepdims=True)
    all_acc[...] = rescale * all_acc[...] + jnp.sum(p, axis=1, keepdims=True)
    m_acc[...] = m_new

    @pl.when(k == nk - 1)
    def _finalize():
        per_row = -jnp.log(pos_acc[...] / all_acc[...] + EPS_NCE)  # [B, 1]
        loss_ref[...] = jnp.mean(per_row).reshape(1, 1)


def _round_up(x, m):
    return ((x + m - 1) // m) * m


def _choose_tile_n(n, d, itemsize, budget_bytes=8 * 1024 * 1024):
    """Pick the N tile so the double-buffered features DMA stays well inside the
    default scoped VMEM of every generation (v7x: 64 MiB physical / 32 MiB
    scoped; v5e: 16 MiB scoped) while staying >= 128 lanes for DMA efficiency.
    Bigger tiles amortize the ~0.35 us per-grid-step overhead."""
    tn = budget_bytes // (2 * d * itemsize)
    tn = max(128, min(4096, (tn // 128) * 128))
    return min(tn, _round_up(n, 128))     # don't tile more than N needs


def instance_memory_forward(image_inputs, text_inputs, image_ids, pids,
                            features, mem_pids, temp=TEMP, tile_n=None):
    """Forward pass of InstanceMemory.forward -> scalar InfoNCE loss.

    text_inputs / image_ids only feed the backward-time memory-bank momentum
    update in the PyTorch module; the forward loss depends solely on
    image_inputs, features, pids and the memory pids.

    For bandwidth-bound banks pass `features` (and `image_inputs`) as bfloat16:
    softmax math stays in f32, only the MXU operands are bf16.
    """
    # TODO(synk): the backward-pass momentum update of the memory bank
    # (InstanceM.backward writing ctx.features in place) is a training-time side
    # effect and is not part of this forward computation.
    del text_inputs, image_ids

    B, D = image_inputs.shape
    N, D2 = features.shape
    assert D == D2

    feat_dtype = features.dtype
    itemsize = jnp.dtype(feat_dtype).itemsize
    tn = tile_n if tile_n is not None else _choose_tile_n(N, D, itemsize)
    assert tn % 128 == 0
    n_pad = _round_up(N, tn)
    nk = n_pad // tn
    needs_mask = n_pad != N

    # Integer pid comparison (float equality is fragile for large IDs).
    pid_col = pids.reshape(B, 1).astype(jnp.int32)
    mem_pid_row = mem_pids.reshape(1, N).astype(jnp.int32)
    if needs_mask:
        features = jnp.pad(features, ((0, n_pad - N), (0, 0)))
        mem_pid_row = jnp.pad(mem_pid_row, ((0, 0), (0, n_pad - N)),
                              constant_values=-1)

    kernel = functools.partial(_instance_memory_nce_kernel,
                               N, 1.0 / temp, needs_mask)
    loss = pl.pallas_call(
        kernel,
        out_shape=jax.ShapeDtypeStruct((1, 1), jnp.float32),
        grid_spec=pltpu.PrefetchScalarGridSpec(
            num_scalar_prefetch=0,
            grid=(nk,),                                   # stream over the bank
            in_specs=[
                pl.BlockSpec((B, D), lambda k: (0, 0)),   # image features (resident)
                pl.BlockSpec((tn, D), lambda k: (k, 0)),  # memory-bank tile
                pl.BlockSpec((B, 1), lambda k: (0, 0)),   # batch pids
                pl.BlockSpec((1, tn), lambda k: (0, k)),  # memory pid tile
            ],
            out_specs=pl.BlockSpec((1, 1), lambda k: (0, 0)),
            scratch_shapes=[
                pltpu.VMEM((B, D), feat_dtype),           # normalized x * 1/temp
                pltpu.VMEM((B, 1), jnp.float32),          # running max
                pltpu.VMEM((B, 1), jnp.float32),          # positive exp sum
                pltpu.VMEM((B, 1), jnp.float32),          # total exp sum
            ],
        ),
        # Single reduction axis over the bank.  (Splitting B across v7x's two
        # TensorCores would not reduce total HBM traffic, so we keep one core.)
        compiler_params=pltpu.CompilerParams(
            dimension_semantics=("arbitrary",)),
    )(image_inputs, features, pid_col, mem_pid_row)
    return loss[0, 0]


def _reference_forward(image_inputs, pids, features, mem_pids, temp=TEMP):
    x = image_inputs.astype(jnp.float32)
    sq = jnp.sum(x * x, axis=1, keepdims=True)
    x = x * lax.rsqrt(jnp.maximum(sq, EPS_NORM * EPS_NORM))
    scores = (x @ features.astype(jnp.float32).T) / temp
    labels = (pids.reshape(-1, 1).astype(jnp.int32)
              == mem_pids.reshape(1, -1).astype(jnp.int32)).astype(jnp.float32)
    e = jnp.exp(scores)
    pos = jnp.sum(e * labels, axis=1)
    tot = jnp.sum(e, axis=1)
    return jnp.mean(-jnp.log(pos / tot + EPS_NCE))


if __name__ == "__main__":
    # Small shapes: batch=8, num_features=32, num_instances=64, 4 identity classes.
    B, D, N, C = 8, 32, 64, 4
    key = jax.random.PRNGKey(0)
    k_img, k_txt, k_feat, k_mpid, k_pid, k_feat2, k_mpid2 = jax.random.split(key, 7)

    image_inputs = jax.random.normal(k_img, (B, D), dtype=jnp.float32)
    text_inputs = jax.random.normal(k_txt, (B, D), dtype=jnp.float32)
    image_ids = jnp.arange(B, dtype=jnp.int32) % N

    # Deterministic synthetic memory-bank state (register_buffer contents).
    features = jax.random.normal(k_feat, (N, D), dtype=jnp.float32)
    features = features / jnp.linalg.norm(features, axis=1, keepdims=True)
    mem_pids = jax.random.randint(k_mpid, (N,), 0, C).astype(jnp.float32)
    pids = jax.random.randint(k_pid, (B,), 0, C).astype(jnp.float32)

    # 1) f32 path (single tile, padded bank -> mask path).
    loss = instance_memory_forward(image_inputs, text_inputs, image_ids, pids,
                                   features, mem_pids)
    loss = jax.block_until_ready(loss)
    ref = _reference_forward(image_inputs, pids, features, mem_pids)
    assert jnp.allclose(loss, ref, rtol=1e-4, atol=1e-4), (loss, ref)

    # 2) bf16 path (halved HBM traffic for the bank; f32 softmax math inside).
    loss_bf16 = instance_memory_forward(
        image_inputs.astype(jnp.bfloat16), text_inputs, image_ids, pids,
        features.astype(jnp.bfloat16), mem_pids)
    loss_bf16 = jax.block_until_ready(loss_bf16)
    ref_bf16 = _reference_forward(image_inputs.astype(jnp.bfloat16), pids,
                                  features.astype(jnp.bfloat16), mem_pids)
    assert jnp.allclose(loss_bf16, ref_bf16, rtol=5e-2, atol=5e-2), (loss_bf16, ref_bf16)

    # 3) Multi-tile streaming path (N not a multiple of the tile -> padding mask).
    N2 = 320
    features2 = jax.random.normal(k_feat2, (N2, D), dtype=jnp.float32)
    features2 = features2 / jnp.linalg.norm(features2, axis=1, keepdims=True)
    mem_pids2 = jax.random.randint(k_mpid2, (N2,), 0, C).astype(jnp.float32)
    loss2 = instance_memory_forward(image_inputs, text_inputs, image_ids, pids,
                                    features2, mem_pids2, tile_n=128)
    loss2 = jax.block_until_ready(loss2)
    ref2 = _reference_forward(image_inputs, pids, features2, mem_pids2)
    assert jnp.allclose(loss2, ref2, rtol=1e-3, atol=1e-3), (loss2, ref2)

    # 4) Aligned bank (N multiple of the tile) -> mask code compiled out.
    N3 = 256
    features3 = jax.random.normal(k_feat2, (N3, D), dtype=jnp.float32)
    features3 = features3 / jnp.linalg.norm(features3, axis=1, keepdims=True)
    mem_pids3 = jax.random.randint(k_mpid2, (N3,), 0, C).astype(jnp.float32)
    loss3 = instance_memory_forward(image_inputs, text_inputs, image_ids, pids,
                                    features3, mem_pids3, tile_n=128)
    loss3 = jax.block_until_ready(loss3)
    ref3 = _reference_forward(image_inputs, pids, features3, mem_pids3)
    assert jnp.allclose(loss3, ref3, rtol=1e-4, atol=1e-4), (loss3, ref3)

    print("KERNEL_OK")
</pallas_src>

<mosaic_0001>
module attributes {stable_mosaic.version = 11 : i64} {
  func.func @_instance_memory_nce_kernel(%arg0: i32, %arg1: memref<8x32xf32, #tpu.memory_space<vmem>>, %arg2: memref<128x32xf32, #tpu.memory_space<vmem>>, %arg3: memref<8x1xi32, #tpu.memory_space<vmem>>, %arg4: memref<1x128xi32, #tpu.memory_space<vmem>>, %arg5: memref<1x1xf32, #tpu.memory_space<vmem>>, %arg6: memref<8x32xf32, #tpu.memory_space<vmem>>, %arg7: memref<8x1xf32, #tpu.memory_space<vmem>>, %arg8: memref<8x1xf32, #tpu.memory_space<vmem>>, %arg9: memref<8x1xf32, #tpu.memory_space<vmem>>) attributes {dimension_semantics = [#tpu.dimension_semantics<arbitrary>], iteration_bounds = array<i64: 1>, scalar_prefetch = 0 : i64, scratch_operands = 4 : i64, tpu.core_type = #tpu.core_type<tc>, window_params = [{pipeline_mode = #tpu.pipeline_mode<synchronous>, transform_indices = @transform_0, window_bounds = array<i64: 8, 32>}, {transform_indices = @transform_1, window_bounds = array<i64: 128, 32>}, {pipeline_mode = #tpu.pipeline_mode<synchronous>, transform_indices = @transform_2, window_bounds = array<i64: 8, 1>}, {transform_indices = @transform_3, window_bounds = array<i64: 1, 128>}, {pipeline_mode = #tpu.pipeline_mode<synchronous>, transform_indices = @transform_4, window_bounds = array<i64: 1, 1>}]} {
    %c0_i32 = arith.constant 0 : i32
    %0 = arith.cmpi eq, %arg0, %c0_i32 : i32
    %1 = arith.extui %0 : i1 to i32
    %c0_i32_0 = arith.constant 0 : i32
    %2 = arith.cmpi ne, %1, %c0_i32_0 : i32
    scf.if %2 {
      %c0_27 = arith.constant 0 : index
      %c0_28 = arith.constant 0 : index
      %48 = vector.load %arg1[%c0_27, %c0_28] : memref<8x32xf32, #tpu.memory_space<vmem>>, vector<8x32xf32>
      %49 = arith.mulf %48, %48 : vector<8x32xf32>
      %cst_29 = arith.constant dense<0.000000e+00> : vector<8xf32>
      %50 = vector.multi_reduction <add>, %49, %cst_29 [1] : vector<8x32xf32> to vector<8xf32>
      %51 = vector.shape_cast %50 : vector<8xf32> to vector<8x1xf32>
      %cst_30 = arith.constant 1.000000e-24 : f32
      %52 = vector.broadcast %cst_30 : f32 to vector<8x1xf32>
      %53 = arith.maximumf %51, %52 : vector<8x1xf32>
      %54 = math.rsqrt %53 : vector<8x1xf32>
      %cst_31 = arith.constant 2.000000e+01 : f32
      %55 = vector.broadcast %cst_31 : f32 to vector<8x1xf32>
      %56 = arith.mulf %54, %55 : vector<8x1xf32>
      %57 = vector.broadcast %56 : vector<8x1xf32> to vector<8x32xf32>
      %58 = arith.mulf %48, %57 : vector<8x32xf32>
      %c0_32 = arith.constant 0 : index
      %c0_33 = arith.constant 0 : index
      %59 = vector.load %arg6[%c0_32, %c0_33] : memref<8x32xf32, #tpu.memory_space<vmem>>, vector<8x32xf32>
      tpu.vector_store %arg6[%c0_32, %c0_33], %58 {strides = array<i32>} : memref<8x32xf32, #tpu.memory_space<vmem>>, vector<8x32xf32>,
      %cst_34 = arith.constant -1.000000e+30 : f32
      %60 = vector.broadcast %cst_34 : f32 to vector<8x1xf32>
      %c0_35 = arith.constant 0 : index
      %c0_36 = arith.constant 0 : index
      %61 = vector.load %arg7[%c0_35, %c0_36] : memref<8x1xf32, #tpu.memory_space<vmem>>, vector<8x1xf32>
      tpu.vector_store %arg7[%c0_35, %c0_36], %60 {strides = array<i32>} : memref<8x1xf32, #tpu.memory_space<vmem>>, vector<8x1xf32>,
      %cst_37 = arith.constant 0.000000e+00 : f32
      %62 = vector.broadcast %cst_37 : f32 to vector<8x1xf32>
      %c0_38 = arith.constant 0 : index
      %c0_39 = arith.constant 0 : index
      %63 = vector.load %arg8[%c0_38, %c0_39] : memref<8x1xf32, #tpu.memory_space<vmem>>, vector<8x1xf32>
      tpu.vector_store %arg8[%c0_38, %c0_39], %62 {strides = array<i32>} : memref<8x1xf32, #tpu.memory_space<vmem>>, vector<8x1xf32>,
      %cst_40 = arith.constant 0.000000e+00 : f32
      %64 = vector.broadcast %cst_40 : f32 to vector<8x1xf32>
      %c0_41 = arith.constant 0 : index
      %c0_42 = arith.constant 0 : index
      %65 = vector.load %arg9[%c0_41, %c0_42] : memref<8x1xf32, #tpu.memory_space<vmem>>, vector<8x1xf32>
      tpu.vector_store %arg9[%c0_41, %c0_42], %64 {strides = array<i32>} : memref<8x1xf32, #tpu.memory_space<vmem>>, vector<8x1xf32>,
    } else {
    }
    %c0 = arith.constant 0 : index
    %c0_1 = arith.constant 0 : index
    %3 = vector.load %arg6[%c0, %c0_1] : memref<8x32xf32, #tpu.memory_space<vmem>>, vector<8x32xf32>
    %c0_2 = arith.constant 0 : index
    %c0_3 = arith.constant 0 : index
    %4 = vector.load %arg2[%c0_2, %c0_3] : memref<128x32xf32, #tpu.memory_space<vmem>>, vector<128x32xf32>
    %cst = arith.constant dense<0.000000e+00> : vector<8x128xf32>
    %5 = tpu.matmul %3, %4, %cst {dimension_numbers = #tpu.dot_dimension_numbers<[1], [1], [0], [0], [0, 0, 1, 0], [], []>} : vector<8x32xf32>, vector<128x32xf32>, vector<8x128xf32> -> vector<8x128xf32>
    %c128_i32 = arith.constant 128 : i32
    %6 = arith.muli %arg0, %c128_i32 : i32
    %7 = tpu.iota {dimensions = array<i32: 1>} : vector<1x128xi32>
    %8 = vector.broadcast %6 : i32 to vector<1x128xi32>
    %9 = arith.addi %8, %7 : vector<1x128xi32>
    %c64_i32 = arith.constant 64 : i32
    %10 = vector.broadcast %c64_i32 : i32 to vector<1x128xi32>
    %11 = arith.cmpi slt, %9, %10 : vector<1x128xi32>
    %cst_4 = arith.constant -1.000000e+30 : f32
    %12 = vector.shape_cast %11 : vector<1x128xi1> to vector<1x128xi1>
    %13 = vector.broadcast %12 : vector<1x128xi1> to vector<8x128xi1>
    %14 = vector.broadcast %cst_4 : f32 to vector<8x128xf32>
    %15 = arith.select %13, %5, %14 : vector<8x128xi1>, vector<8x128xf32>
    %c0_5 = arith.constant 0 : index
    %c0_6 = arith.constant 0 : index
    %16 = vector.load %arg3[%c0_5, %c0_6] : memref<8x1xi32, #tpu.memory_space<vmem>>, vector<8x1xi32>
    %c0_7 = arith.constant 0 : index
    %c0_8 = arith.constant 0 : index
    %17 = vector.load %arg4[%c0_7, %c0_8] : memref<1x128xi32, #tpu.memory_space<vmem>>, vector<1x128xi32>
    %18 = vector.broadcast %16 : vector<8x1xi32> to vector<8x128xi32>
    %19 = vector.broadcast %17 : vector<1x128xi32> to vector<8x128xi32>
    %20 = arith.cmpi eq, %18, %19 : vector<8x128xi32>
    %c0_9 = arith.constant 0 : index
    %c0_10 = arith.constant 0 : index
    %21 = vector.load %arg7[%c0_9, %c0_10] : memref<8x1xf32, #tpu.memory_space<vmem>>, vector<8x1xf32>
    %cst_11 = arith.constant dense<0xFF800000> : vector<8xf32>
    %22 = vector.multi_reduction <maximumf>, %15, %cst_11 [1] : vector<8x128xf32> to vector<8xf32>
    %23 = vector.shape_cast %22 : vector<8xf32> to vector<8x1xf32>
    %24 = arith.maximumf %21, %23 : vector<8x1xf32>
    %25 = arith.subf %21, %24 : vector<8x1xf32>
    %26 = math.exp %25 : vector<8x1xf32>
    %27 = vector.broadcast %24 : vector<8x1xf32> to vector<8x128xf32>
    %28 = arith.subf %15, %27 : vector<8x128xf32>
    %29 = math.exp %28 : vector<8x128xf32>
    %c0_12 = arith.constant 0 : index
    %c0_13 = arith.constant 0 : index
    %30 = vector.load %arg8[%c0_12, %c0_13] : memref<8x1xf32, #tpu.memory_space<vmem>>, vector<8x1xf32>
    %31 = arith.mulf %26, %30 : vector<8x1xf32>
    %cst_14 = arith.constant 0.000000e+00 : f32
    %32 = vector.broadcast %cst_14 : f32 to vector<8x128xf32>
    %33 = arith.select %20, %29, %32 : vector<8x128xi1>, vector<8x128xf32>
    %cst_15 = arith.constant dense<0.000000e+00> : vector<8xf32>
    %34 = vector.multi_reduction <add>, %33, %cst_15 [1] : vector<8x128xf32> to vector<8xf32>
    %35 = vector.shape_cast %34 : vector<8xf32> to vector<8x1xf32>
    %36 = arith.addf %31, %35 : vector<8x1xf32>
    %c0_16 = arith.constant 0 : index
    %c0_17 = arith.constant 0 : index
    %37 = vector.load %arg8[%c0_16, %c0_17] : memref<8x1xf32, #tpu.memory_space<vmem>>, vector<8x1xf32>
    tpu.vector_store %arg8[%c0_16, %c0_17], %36 {strides = array<i32>} : memref<8x1xf32, #tpu.memory_space<vmem>>, vector<8x1xf32>,
    %c0_18 = arith.constant 0 : index
    %c0_19 = arith.constant 0 : index
    %38 = vector.load %arg9[%c0_18, %c0_19] : memref<8x1xf32, #tpu.memory_space<vmem>>, vector<8x1xf32>
    %39 = arith.mulf %26, %38 : vector<8x1xf32>
    %cst_20 = arith.constant dense<0.000000e+00> : vector<8xf32>
    %40 = vector.multi_reduction <add>, %29, %cst_20 [1] : vector<8x128xf32> to vector<8xf32>
    %41 = vector.shape_cast %40 : vector<8xf32> to vector<8x1xf32>
    %42 = arith.addf %39, %41 : vector<8x1xf32>
    %c0_21 = arith.constant 0 : index
    %c0_22 = arith.constant 0 : index
    %43 = vector.load %arg9[%c0_21, %c0_22] : memref<8x1xf32, #tpu.memory_space<vmem>>, vector<8x1xf32>
    tpu.vector_store %arg9[%c0_21, %c0_22], %42 {strides = array<i32>} : memref<8x1xf32, #tpu.memory_space<vmem>>, vector<8x1xf32>,
    %c0_23 = arith.constant 0 : index
    %c0_24 = arith.constant 0 : index
    %44 = vector.load %arg7[%c0_23, %c0_24] : memref<8x1xf32, #tpu.memory_space<vmem>>, vector<8x1xf32>
    tpu.vector_store %arg7[%c0_23, %c0_24], %24 {strides = array<i32>} : memref<8x1xf32, #tpu.memory_space<vmem>>, vector<8x1xf32>,
    %c0_i32_25 = arith.constant 0 : i32
    %45 = arith.cmpi eq, %arg0, %c0_i32_25 : i32
    %46 = arith.extui %45 : i1 to i32
    %c0_i32_26 = arith.constant 0 : i32
    %47 = arith.cmpi ne, %46, %c0_i32_26 : i32
    scf.if %47 {
      %c0_27 = arith.constant 0 : index
      %c0_28 = arith.constant 0 : index
      %48 = vector.load %arg8[%c0_27, %c0_28] : memref<8x1xf32, #tpu.memory_space<vmem>>, vector<8x1xf32>
      %c0_29 = arith.constant 0 : index
      %c0_30 = arith.constant 0 : index
      %49 = vector.load %arg9[%c0_29, %c0_30] : memref<8x1xf32, #tpu.memory_space<vmem>>, vector<8x1xf32>
      %50 = arith.divf %48, %49 : vector<8x1xf32>
      %cst_31 = arith.constant 9.99999993E-9 : f32
      %51 = vector.broadcast %cst_31 : f32 to vector<8x1xf32>
      %52 = arith.addf %50, %51 : vector<8x1xf32>
      %53 = math.log %52 : vector<8x1xf32>
      %cst_32 = arith.constant 0.000000e+00 : f32
      %54 = vector.broadcast %cst_32 : f32 to vector<8x1xf32>
      %55 = arith.subf %54, %53 : vector<8x1xf32>
      %56 = vector.shape_cast %55 : vector<8x1xf32> to vector<1x8x1xf32>
      %cst_33 = arith.constant dense<0.000000e+00> : vector<1xf32>
      %57 = vector.multi_reduction <add>, %56, %cst_33 [1, 2] : vector<1x8x1xf32> to vector<1xf32>
      %58 = vector.shape_cast %57 : vector<1xf32> to vector<1x1x1xf32>
      %59 = vector.extract %58[0, 0, 0] : f32 from vector<1x1x1xf32>
      %cst_34 = arith.constant 8.000000e+00 : f32
      %60 = arith.divf %59, %cst_34 : f32
      %61 = vector.broadcast %60 : f32 to vector<1x1xf32>
      %c0_35 = arith.constant 0 : index
      %c0_36 = arith.constant 0 : index
      %62 = vector.load %arg5[%c0_35, %c0_36] : memref<1x1xf32, #tpu.memory_space<vmem>>, vector<1x1xf32>
      tpu.vector_store %arg5[%c0_35, %c0_36], %61 {strides = array<i32>} : memref<1x1xf32, #tpu.memory_space<vmem>>, vector<1x1xf32>,
    } else {
    }
    return
  }
  func.func @transform_0(%arg0: i32) -> (i32, i32) {
    %c0_i32 = arith.constant 0 : i32
    %c0_i32_0 = arith.constant 0 : i32
    %c0_i32_1 = arith.constant 0 : i32
    return %c0_i32, %c0_i32_0 : i32, i32
  }
  func.func @transform_1(%arg0: i32) -> (i32, i32) {
    %c0_i32 = arith.constant 0 : i32
    %c0_i32_0 = arith.constant 0 : i32
    return %arg0, %c0_i32 : i32, i32
  }
  func.func @transform_2(%arg0: i32) -> (i32, i32) {
    %c0_i32 = arith.constant 0 : i32
    %c0_i32_0 = arith.constant 0 : i32
    %c0_i32_1 = arith.constant 0 : i32
    return %c0_i32, %c0_i32_0 : i32, i32
  }
  func.func @transform_3(%arg0: i32) -> (i32, i32) {
    %c0_i32 = arith.constant 0 : i32
    %c0_i32_0 = arith.constant 0 : i32
    return %c0_i32, %arg0 : i32, i32
  }
  func.func @transform_4(%arg0: i32) -> (i32, i32) {
    %c0_i32 = arith.constant 0 : i32
    %c0_i32_0 = arith.constant 0 : i32
    %c0_i32_1 = arith.constant 0 : i32
    return %c0_i32, %c0_i32_0 : i32, i32
  }
}

</mosaic_0001>

<bundles_post_ra>
// kernel: tpu_custom_call.1
= control target key start
LH: loop header
LB: loop body
LE: loop exit
PB: predicated region body
PF: predicated region fallthrough
CT: control target
= control target key end

     0   :  { %vm24_vm0 = vcmask 261120   ;;  %v412_v5 = vmov 0.0|0.0   ;;  %s544_s0 = inlined_call_operand.vmem [shape: f32[8,32], index: 0, kind: input, shape index: {}]   ;;  %s545_s1 = inlined_call_operand.vmem [shape: f32[128,32], index: 1, kind: input, shape index: {}]   ;;  %s546_s2 = inlined_call_operand.vmem [shape: s32[8,1], index: 2, kind: input, shape index: {}]   ;;  %s547_s3 = inlined_call_operand.vmem [shape: s32[1,128], index: 3, kind: input, shape index: {}]   ;;  %s548_s4 = inlined_call_operand.hbm [shape: f32[1,1], index: 4, kind: output, shape index: {}]  }
   0x1   :  { %v22_v0 = vld [vmem:[%s544_s0] sm:$0xff]  ;;  %v39_v2 = vld [vmem:[%s545_s1 + $0x8] sm:$0xff]  ;;  %vm454_vm1 = vmpackc.low %vm24_vm0, %vm24_vm0  ;;  %336 = vmatprep.subr.bf16.mxu0 %v412_v5 }
   0x2   :  { %v38_v1 = vld [vmem:[%s545_s1] sm:$0xff]  ;;  %v23_v3 = vmul.f32 %v22_v0, %v22_v0  ;;  %v40_v8 = vld [vmem:[%s545_s1 + $0x10] sm:$0xff]  ;;  %v41_v9 = vld [vmem:[%s545_s1 + $0x18] sm:$0xff] }
   0x3   :  { %v337_v6 = vpack.c.bf16 %v39_v2, %v38_v1 }
   0x4   :  { %v25_v7 = vsel %vm24_vm0, %v23_v3, 0.0 }
   0x5   :  { %339 = vmatpush3.bf16.xpose.msk.msra.mxu0 %vm454_vm1, %v337_v6  ;;  %26 = vadd.xlane.f32.xlu0 %v25_v7 }
   0x6   :  { %340 = vmatprep.subr.bf16.mxu0 %v412_v5 }
   0x7   :  { %9 = vsyncpa [#allocation7], 0  ;;  %v341_v10 = vpack.c.bf16 %v41_v9, %v40_v8  ;;  %v42_v11 = vld [vmem:[%s545_s1 + $0x20] sm:$0xff]  ;;  %v43_v12 = vld [vmem:[%s545_s1 + $0x28] sm:$0xff]  ;;  %vm33_vm2 = vcmask 7168   ;;  %v413_v22 = vmov 0.0   ;;  %v177_v37 = vlaneseq }
   0x8   :  { %v345_v13 = vpack.c.bf16 %v43_v12, %v42_v11  ;;  %v44_v14 = vld [vmem:[%s545_s1 + $0x30] sm:$0xff]  ;;  %v45_v15 = vld [vmem:[%s545_s1 + $0x38] sm:$0xff]  ;;  %v46_v17 = vld [vmem:[%s545_s1 + $0x40] sm:$0xff]  ;;  %35 = vst.msk [vmem:[#allocation4] sm:$0xff] %vm33_vm2, %v413_v22  ;;  %vm414_vm3 = vmmov 0   ;;  %v416_v42 = vmov 0  }
   0x9   :  { %v349_v16 = vpack.c.bf16 %v45_v15, %v44_v14  ;;  %v47_v18 = vld [vmem:[%s545_s1 + $0x48] sm:$0xff]  ;;  %v48_v20 = vld [vmem:[%s545_s1 + $0x50] sm:$0xff]  ;;  %v49_v21 = vld [vmem:[%s545_s1 + $0x58] sm:$0xff]  ;;  %36 = vst.msk [vmem:[#allocation5] sm:$0xff] %vm33_vm2, %v413_v22  ;;  %333 = vmatprep.mubr.msk.f32.mxu0 %vm414_vm3, %v413_v22  ;;  %v415_v36 = vmov -1e+30   ;;  %376 = vset.pattern.permute.xlu1 %v416_v42 }
   0xa   :  { %v353_v19 = vpack.c.bf16 %v47_v18, %v46_v17  ;;  %v357_v23 = vpack.c.bf16 %v49_v21, %v48_v20  ;;  %v50_v24 = vld [vmem:[%s545_s1 + $0x60] sm:$0xff]  ;;  %v51_v25 = vld [vmem:[%s545_s1 + $0x68] sm:$0xff]  ;;  %v52_v27 = vld [vmem:[%s545_s1 + $0x70] sm:$0xff]  ;;  %34 = vst.msk [vmem:[#allocation3] sm:$0xff] %vm33_vm2, %v415_v36  ;;  %v178_v38 = vand.u32 127, %v177_v37  ;;  %377 = vset.pattern.permute.xlu0 %v416_v42  ;;  %vm250_vm6 = vcmask 0  }
   0xb   :  { %v361_v26 = vpack.c.bf16 %v51_v25, %v50_v24  ;;  %v53_v28 = vld [vmem:[%s545_s1 + $0x78] sm:$0xff]  ;;  %v185_v47 = vld [vmem:[%s546_s2] sm:$0xff]  ;;  %s417_s2 = smov [#allocation6]  }
   0xc   :  { %v365_v29 = vpack.c.bf16 %v53_v28, %v52_v27  ;;  %vm181_vm4 = vcmp.lt.s32.totalorder %v178_v38, 64  ;;  %v283_v51 = vld [vmem:[%s547_s3] ss:$0 sm:$0xff]  ;;  %s258_s3 = sshll.u32 %s417_s2, 4  ;;  %s259_s3 = int_to_ptr.vmem [resolvable:$true] %s258_s3 }
   0xd   :  { %343 = vmatpush3.bf16.xpose.msk.msra.mxu0 %vm454_vm1, %v341_v10  ;;  %s388_s26 = scalar_lea.vmem %s259_s3, 16  ;;  %s392_s27 = scalar_lea.vmem %s259_s3, 32 }
   0xe   :  { %344 = vmatprep.subr.bf16.mxu0 %v412_v5  ;;  %p389_p0 = scmp.ne.s32.totalorder %s259_s3, %s388_s26  ;;  %p393_p1 = scmp.lt.s32.totalorder %s259_s3, %s259_s3 }
   0xf   :  { %v210_v58 = vld [vmem:[#allocation4] sm:$0xff]  ;;  %p394_p2 = scmp.lt.s32.totalorder %s392_s27, %s388_s26 }
  0x10   :  { %v218_v57 = vld [vmem:[#allocation5] sm:$0xff] }
  0x11   :  { %v195_v43 = vld [vmem:[#allocation3] sm:$0xff]  ;;  %p395_p3 = por %p394_p2, %p393_p1 }
  0x13   :  { %p396_p4 = pnand %p395_p3, %p389_p0 }
  0x15   :  { %347 = vmatpush3.bf16.xpose.msk.msra.mxu0 %vm454_vm1, %v345_v13 }
  0x16   :  { %348 = vmatprep.subr.bf16.mxu0 %v412_v5 }
  0x1d   :  { %351 = vmatpush3.bf16.xpose.msk.msra.mxu0 %vm454_vm1, %v349_v16 }
  0x1e   :  { %352 = vmatprep.subr.bf16.mxu0 %v412_v5 }
  0x25   :  { %355 = vmatpush3.bf16.xpose.msk.msra.mxu0 %vm454_vm1, %v353_v19 }
  0x26   :  { %356 = vmatprep.subr.bf16.mxu0 %v412_v5 }
  0x2d   :  { %359 = vmatpush3.bf16.xpose.msk.msra.mxu0 %vm454_vm1, %v357_v23 }
  0x2e   :  { %360 = vmatprep.subr.bf16.mxu0 %v412_v5 }
  0x35   :  { %363 = vmatpush3.bf16.xpose.msk.msra.mxu0 %vm454_vm1, %v361_v26 }
  0x36   :  { %364 = vmatprep.subr.bf16.mxu0 %v412_v5 }
  0x3d   :  { %367 = vmatpush3.bf16.xpose.msk.msra.mxu0 %vm454_vm1, %v365_v29 }
  0x92   :  { %v27_v30 = vpop.xlane.xlu0 %26 }
  0x93   :  { %v28_v31 = vmax.f32 %v27_v30, 1e-24 }
  0x95   :  { %378 = vrsqrt.f32 %v28_v31 }
  0x9f   :  { %v379_v32 = vpop.eup %378 }
  0xa0   :  { %v30_v33 = vmul.f32 20.0, %v379_v32 }
  0xa2   :  { %v31_v34 = vmul.f32 %v30_v33, %v22_v0 }
  0xa4   :  { %32 = vst.msk [vmem:[#allocation2] sm:$0xff] %vm24_vm0, %v31_v34 }
  0xab   :  { %v37_v35 = vld [vmem:[#allocation2] sm:$0xff] }
  0xac   :  { %334 = vmatmul.mubr.msk.f32.vlgmr.msra.gmra.mrb[0].mxu0 %vm24_vm0, %v37_v35 }
 0x17f   :  { %v172_v39 = vpop.f32.mrb[0].mxu0 }
 0x180   :  { %v335_v40 = vpop.f32.mrb[1].mxu0  ;;  %v184_v41 = vsel %vm181_vm4, %v172_v39, -1e+30 }
 0x181   :  { %196 = vmax.xlane.f32.xlu0 %v184_v41 }
 0x20e   :  { %v197_v44 = vpop.xlane.xlu0 %196 }
 0x20f   :  { %v198_v45 = vmax.f32 %v195_v43, %v197_v44 }
 0x211   :  { %v199_v46 = vsub.f32 %v195_v43, %v198_v45  ;;  %224 = vst.msk [vmem:[#allocation3] sm:$0xff] %vm33_vm2, %v198_v45  ;;  %204 = vperm.xlu1 %376, %v198_v45  }
 0x213   :  { %v200_v55 = vmul.f32 1.442695, %v199_v46 }
 0x215   :  { %188 = vperm.xlu1 %376, %v185_v47  }
 0x290   :  { %v205_v48 = vpop.permute.xlu1 %204 }
 0x291   :  { %v207_v49 = vsub.f32 %v184_v41, %v205_v48 }
 0x293   :  { %v208_v50 = vmul.f32 1.442695, %v207_v49 }
 0x294   :  { %v189_v52 = vpop.permute.xlu1 %188 }
 0x295   :  { %380 = vpow2.f32 %v208_v50  ;;  %vm194_vm5 = vcmp.eq.s32.totalorder %v189_v52, %v283_v51 }
 0x296   :  { %382 = vpow2.f32 %v200_v55 }
 0x29f   :  { %v381_v53 = vpop.eup %380 }
 0x2a0   :  { %220 = vadd.xlane.f32.xlu0 %v381_v53  ;;  %v212_v54 = vsel %vm194_vm5, %v381_v53, 0.0  ;;  %v383_v56 = vpop.eup %382 }
 0x2a1   :  { %213 = vadd.xlane.f32.xlu1 %v212_v54  ;;  %v219_v59 = vmul.f32 %v383_v56, %v218_v57  ;;  %v211_v61 = vmul.f32 %v383_v56, %v210_v58 }
 0x32d   :  { %v221_v60 = vpop.xlane.xlu0 %220 }
 0x32e   :  { %v222_v62 = vadd.f32 %v221_v60, %v219_v59  ;;  %v214_v63 = vpop.xlane.xlu1 %213 }
 0x32f   :  { %v215_v0 = vadd.f32 %v214_v63, %v211_v61 }
 0x330   :  { %223 = vst.msk [vmem:[#allocation5] sm:$0xff] %vm33_vm2, %v222_v62 }
 0x331   :  { %217 = vst.msk [vmem:[#allocation4] sm:$0xff] %vm33_vm2, %v215_v0 }
 0x337   :  { %v229_v1 = vld [vmem:[#allocation5] sm:$0xff] }
 0x338   :  { %384 = vrcp.f32 %v229_v1  ;;  %v228_v3 = vld [vmem:[#allocation4] sm:$0xff] }
 0x342   :  { %v385_v2 = vpop.eup %384 }
 0x343   :  { %v231_v4 = vmul.f32 %v385_v2, %v228_v3 }
 0x345   :  { %v232_v5 = vadd.f32 1e-08, %v231_v4 }
 0x347   :  { %386 = vlog2.f32 %v232_v5 }
 0x351   :  { %v387_v6 = vpop.eup %386 }
 0x352   :  { %v234_v7 = vmul.f32 0.6931472, %v387_v6 }
 0x354   :  { %v235_v8 = vsub.f32 0.0, %v234_v7 }
 0x356   :  { %v236_v9 = vsel %vm33_vm2, %v235_v8, 0.0 }
 0x357   :  { %237 = vadd.xlane.f32.xlu0 %v236_v9 }
 0x3e4   :  { %v238_v10 = vpop.xlane.xlu0 %237 }
 0x3e5   :  { %v239_v11 = vrot.slane %v238_v10, 4 }
 0x3e7   :  { %v240_v12 = vadd.f32 %v239_v11, %v238_v10 }
 0x3e9   :  { %v241_v13 = vrot.slane %v240_v12, 2 }
 0x3eb   :  { %v242_v14 = vadd.f32 %v241_v13, %v240_v12 }
 0x3ed   :  { %v243_v15 = vrot.slane %v242_v14, 1 }
 0x3ef   :  { %v244_v16 = vadd.f32 %v243_v15, %v242_v14 }
 0x3f1   :  { %368 = vpush %v244_v16 }
 0x422   :  { %s369_s24 = spop %368 }
 0x423   :  { %s248_s25 = smul.f32 0.125, %s369_s24 }
 0x425   :  { %v249_v17 = vstv %s248_s25 }
 0x426   :  { %251 = vst.msk [vmem:[#allocation6] sm:$0x1] %vm250_vm6, %v249_v17 }
 0x427   :  { %399 = shalt.err (!%p396_p4)
}
 0x428   :  { %s400_s30 = scalar_lea.hbm %s548_s4, 16 }
 0x429   :  { %p401_p5 = scmp.ne.s32.totalorder %s548_s4, %s400_s30  ;;  %p404_p6 = scmp.lt.u32.totalorder %s400_s30, %s548_s4 }
 0x42b   :  { %p406_p7 = pnand %p404_p6, %p401_p5 }
 0x42d   :  { %409 = shalt.err (!%p406_p7)
}
 0x42e   :  { %261 = dma.vmem_to_hbm [thread:$0]  %s259_s3, 16, %s548_s4, [#allocation7]  }
 0x42f   :  { %410 = dma.done.wait [#allocation7], 16  }
 0x430   :  { %411 = vsyncadd [#allocation7], 4294967280 }
 0x431   :  { %265 = vsyncpa [#allocation7], 1 }

</bundles_post_ra>
